<compile_context>
chip_gen: v6e
topology: v6e:2x2x1
jax: 0.10.0
libtpu: 0.0.40
codegen_flags: <defaults>
</compile_context>

<pallas_src>
import functools

import jax
import jax.numpy as jnp
from jax import lax
from jax.experimental import pallas as pl
from jax.experimental.pallas import tpu as pltpu


def self_output_kernel(x_ref, res_ref, w_ref, b_ref, gamma_ref, beta_ref, o_ref, *, eps):
    # x_ref:    (tm, H)   activation tile
    # res_ref:  (tm, H)   residual (input_tensor) tile
    # w_ref:    (H, H)    dense weight in PyTorch (out, in) layout
    # b_ref:    (1, H)    dense bias
    # gamma_ref,beta_ref: (1, H) LayerNorm params
    # o_ref:    (tm, H)   output tile
    x = x_ref[...]
    w = w_ref[...]

    # x @ W^T on the native (out, in) layout: contract dim 1 of both operands.
    y = lax.dot_general(
        x, w,
        dimension_numbers=(((1,), (1,)), ((), ())),
        preferred_element_type=jnp.float32,
    )
    y = y + b_ref[...].astype(jnp.float32)

    # TODO(synk): dropout is the identity here (eval-mode forward). Training-mode
    # dropout would use pltpu.prng_seed + pltpu.prng_random_bits to build the mask.

    # Residual add, then LayerNorm over the feature (lane) axis, all in f32.
    y = y + res_ref[...].astype(jnp.float32)
    u = jnp.mean(y, axis=-1, keepdims=True)
    d = y - u
    s = jnp.mean(d * d, axis=-1, keepdims=True)
    inv = lax.rsqrt(s + eps)
    out = gamma_ref[...].astype(jnp.float32) * (d * inv) + beta_ref[...].astype(jnp.float32)

    o_ref[...] = out.astype(o_ref.dtype)


def self_output_forward(hidden_states, input_tensor, weight, bias, gamma, beta,
                        *, eps=1e-12, tm=None):
    """SelfOutput forward.

    hidden_states, input_tensor: (B, S, H)
    weight: (H, H)   PyTorch nn.Linear layout (out_features, in_features)
    bias, gamma, beta: (H,)
    """
    B, S, H = hidden_states.shape
    M = B * S

    x2d = hidden_states.reshape(M, H)
    r2d = input_tensor.reshape(M, H)
    b2d = bias.reshape(1, H)
    g2d = gamma.reshape(1, H)
    be2d = beta.reshape(1, H)

    if tm is None:
        # Aim for >= 2 grid steps (v7x megacore) when M allows, keep rows a
        # multiple of 8 sublanes, and cap at 256 so (2 x-tiles + 2 res-tiles +
        # weight + out) stays well inside v7x's 64 MiB VMEM even at H=1024 f32.
        half = -(-M // 2)
        tm = min(256, max(8, ((half + 7) // 8) * 8))

    grid_m = pl.cdiv(M, tm)
    M_pad = grid_m * tm
    if M_pad != M:
        pad = M_pad - M
        x2d = jnp.pad(x2d, ((0, pad), (0, 0)))
        r2d = jnp.pad(r2d, ((0, pad), (0, 0)))

    kernel = functools.partial(self_output_kernel, eps=eps)

    out2d = pl.pallas_call(
        kernel,
        out_shape=jax.ShapeDtypeStruct((M_pad, H), hidden_states.dtype),
        grid_spec=pltpu.PrefetchScalarGridSpec(
            num_scalar_prefetch=0,
            grid=(grid_m,),
            in_specs=[
                pl.BlockSpec((tm, H), lambda i: (i, 0)),   # hidden_states tile
                pl.BlockSpec((tm, H), lambda i: (i, 0)),   # residual tile
                pl.BlockSpec((H, H), lambda i: (0, 0)),    # weight (resident)
                pl.BlockSpec((1, H), lambda i: (0, 0)),    # bias
                pl.BlockSpec((1, H), lambda i: (0, 0)),    # gamma
                pl.BlockSpec((1, H), lambda i: (0, 0)),    # beta
            ],
            out_specs=pl.BlockSpec((tm, H), lambda i: (i, 0)),
        ),
        compiler_params=pltpu.CompilerParams(
            dimension_semantics=("parallel",)),
    )(x2d, r2d, weight, b2d, g2d, be2d)

    return out2d[:M].reshape(B, S, H)


if __name__ == "__main__":
    # Small shapes consistent with the module's forward.
    batch, seq, hidden_size = 2, 8, 32
    dropout_prob = 0.1  # eval-mode forward: dropout is identity

    key = jax.random.PRNGKey(0)
    kx, kr, kw, kb = jax.random.split(key, 4)

    hidden_states = jax.random.normal(kx, (batch, seq, hidden_size), jnp.float32)
    input_tensor = jax.random.normal(kr, (batch, seq, hidden_size), jnp.float32)

    # Deterministic parameter init (matches nn.Linear's uniform scale; LayerNorm
    # gamma=1, beta=0 as in the module's __init__).
    bound = 1.0 / (hidden_size ** 0.5)
    weight = jax.random.uniform(kw, (hidden_size, hidden_size),
                                jnp.float32, minval=-bound, maxval=bound)
    bias = jax.random.uniform(kb, (hidden_size,),
                              jnp.float32, minval=-bound, maxval=bound)
    gamma = jnp.ones((hidden_size,), jnp.float32)
    beta = jnp.zeros((hidden_size,), jnp.float32)

    out = self_output_forward(hidden_states, input_tensor, weight, bias, gamma, beta)
    out = jax.block_until_ready(out)

    # Reference in plain JAX (same math as the PyTorch forward, eval mode).
    y = jnp.einsum("bsh,oh->bso", hidden_states, weight) + bias
    y = y + input_tensor
    u = jnp.mean(y, axis=-1, keepdims=True)
    s = jnp.mean((y - u) ** 2, axis=-1, keepdims=True)
    ref = gamma * ((y - u) / jnp.sqrt(s + 1e-12)) + beta

    assert out.shape == (batch, seq, hidden_size)
    assert jnp.allclose(out, ref, atol=1e-5, rtol=1e-5)

    print("KERNEL_OK")
</pallas_src>

<mosaic_0001>
module attributes {stable_mosaic.version = 11 : i64} {
  func.func @self_output_kernel(%arg0: i32, %arg1: memref<8x32xf32, #tpu.memory_space<vmem>>, %arg2: memref<8x32xf32, #tpu.memory_space<vmem>>, %arg3: memref<32x32xf32, #tpu.memory_space<vmem>>, %arg4: memref<1x32xf32, #tpu.memory_space<vmem>>, %arg5: memref<1x32xf32, #tpu.memory_space<vmem>>, %arg6: memref<1x32xf32, #tpu.memory_space<vmem>>, %arg7: memref<8x32xf32, #tpu.memory_space<vmem>>) attributes {dimension_semantics = [#tpu.dimension_semantics<parallel>], iteration_bounds = array<i64: 2>, scalar_prefetch = 0 : i64, scratch_operands = 0 : i64, tpu.core_type = #tpu.core_type<tc>, window_params = [{transform_indices = @transform_0, window_bounds = array<i64: 8, 32>}, {transform_indices = @transform_1, window_bounds = array<i64: 8, 32>}, {pipeline_mode = #tpu.pipeline_mode<synchronous>, transform_indices = @transform_2, window_bounds = array<i64: 32, 32>}, {pipeline_mode = #tpu.pipeline_mode<synchronous>, transform_indices = @transform_3, window_bounds = array<i64: 1, 32>}, {pipeline_mode = #tpu.pipeline_mode<synchronous>, transform_indices = @transform_4, window_bounds = array<i64: 1, 32>}, {pipeline_mode = #tpu.pipeline_mode<synchronous>, transform_indices = @transform_5, window_bounds = array<i64: 1, 32>}, {transform_indices = @transform_6, window_bounds = array<i64: 8, 32>}]} {
    %c0 = arith.constant 0 : index
    %c0_0 = arith.constant 0 : index
    %0 = vector.load %arg1[%c0, %c0_0] : memref<8x32xf32, #tpu.memory_space<vmem>>, vector<8x32xf32>
    %c0_1 = arith.constant 0 : index
    %c0_2 = arith.constant 0 : index
    %1 = vector.load %arg3[%c0_1, %c0_2] : memref<32x32xf32, #tpu.memory_space<vmem>>, vector<32x32xf32>
    %cst = arith.constant dense<0.000000e+00> : vector<8x32xf32>
    %2 = tpu.matmul %0, %1, %cst {dimension_numbers = #tpu.dot_dimension_numbers<[1], [1], [0], [0], [0, 0, 1, 0], [], []>} : vector<8x32xf32>, vector<32x32xf32>, vector<8x32xf32> -> vector<8x32xf32>
    %c0_3 = arith.constant 0 : index
    %c0_4 = arith.constant 0 : index
    %3 = vector.load %arg4[%c0_3, %c0_4] : memref<1x32xf32, #tpu.memory_space<vmem>>, vector<1x32xf32>
    %4 = vector.broadcast %3 : vector<1x32xf32> to vector<8x32xf32>
    %5 = arith.addf %2, %4 : vector<8x32xf32>
    %c0_5 = arith.constant 0 : index
    %c0_6 = arith.constant 0 : index
    %6 = vector.load %arg2[%c0_5, %c0_6] : memref<8x32xf32, #tpu.memory_space<vmem>>, vector<8x32xf32>
    %7 = arith.addf %5, %6 : vector<8x32xf32>
    %cst_7 = arith.constant dense<0.000000e+00> : vector<8xf32>
    %8 = vector.multi_reduction <add>, %7, %cst_7 [1] : vector<8x32xf32> to vector<8xf32>
    %9 = vector.shape_cast %8 : vector<8xf32> to vector<8x1xf32>
    %cst_8 = arith.constant 3.200000e+01 : f32
    %10 = vector.broadcast %cst_8 : f32 to vector<8x1xf32>
    %11 = arith.divf %9, %10 : vector<8x1xf32>
    %12 = vector.broadcast %11 : vector<8x1xf32> to vector<8x32xf32>
    %13 = arith.subf %7, %12 : vector<8x32xf32>
    %14 = arith.mulf %13, %13 : vector<8x32xf32>
    %cst_9 = arith.constant dense<0.000000e+00> : vector<8xf32>
    %15 = vector.multi_reduction <add>, %14, %cst_9 [1] : vector<8x32xf32> to vector<8xf32>
    %16 = vector.shape_cast %15 : vector<8xf32> to vector<8x1xf32>
    %cst_10 = arith.constant 3.200000e+01 : f32
    %17 = vector.broadcast %cst_10 : f32 to vector<8x1xf32>
    %18 = arith.divf %16, %17 : vector<8x1xf32>
    %cst_11 = arith.constant 9.99999996E-13 : f32
    %19 = vector.broadcast %cst_11 : f32 to vector<8x1xf32>
    %20 = arith.addf %18, %19 : vector<8x1xf32>
    %21 = math.rsqrt %20 : vector<8x1xf32>
    %c0_12 = arith.constant 0 : index
    %c0_13 = arith.constant 0 : index
    %22 = vector.load %arg5[%c0_12, %c0_13] : memref<1x32xf32, #tpu.memory_space<vmem>>, vector<1x32xf32>
    %23 = vector.broadcast %21 : vector<8x1xf32> to vector<8x32xf32>
    %24 = arith.mulf %13, %23 : vector<8x32xf32>
    %25 = vector.broadcast %22 : vector<1x32xf32> to vector<8x32xf32>
    %26 = arith.mulf %25, %24 : vector<8x32xf32>
    %c0_14 = arith.constant 0 : index
    %c0_15 = arith.constant 0 : index
    %27 = vector.load %arg6[%c0_14, %c0_15] : memref<1x32xf32, #tpu.memory_space<vmem>>, vector<1x32xf32>
    %28 = vector.broadcast %27 : vector<1x32xf32> to vector<8x32xf32>
    %29 = arith.addf %26, %28 : vector<8x32xf32>
    %c0_16 = arith.constant 0 : index
    %c0_17 = arith.constant 0 : index
    %30 = vector.load %arg7[%c0_16, %c0_17] : memref<8x32xf32, #tpu.memory_space<vmem>>, vector<8x32xf32>
    tpu.vector_store %arg7[%c0_16, %c0_17], %29 {strides = array<i32>} : memref<8x32xf32, #tpu.memory_space<vmem>>, vector<8x32xf32>,
    return
  }
  func.func @transform_0(%arg0: i32) -> (i32, i32) {
    %c0_i32 = arith.constant 0 : i32
    %c0_i32_0 = arith.constant 0 : i32
    return %arg0, %c0_i32 : i32, i32
  }
  func.func @transform_1(%arg0: i32) -> (i32, i32) {
    %c0_i32 = arith.constant 0 : i32
    %c0_i32_0 = arith.constant 0 : i32
    return %arg0, %c0_i32 : i32, i32
  }
  func.func @transform_2(%arg0: i32) -> (i32, i32) {
    %c0_i32 = arith.constant 0 : i32
    %c0_i32_0 = arith.constant 0 : i32
    %c0_i32_1 = arith.constant 0 : i32
    return %c0_i32, %c0_i32_0 : i32, i32
  }
  func.func @transform_3(%arg0: i32) -> (i32, i32) {
    %c0_i32 = arith.constant 0 : i32
    %c0_i32_0 = arith.constant 0 : i32
    %c0_i32_1 = arith.constant 0 : i32
    return %c0_i32, %c0_i32_0 : i32, i32
  }
  func.func @transform_4(%arg0: i32) -> (i32, i32) {
    %c0_i32 = arith.constant 0 : i32
    %c0_i32_0 = arith.constant 0 : i32
    %c0_i32_1 = arith.constant 0 : i32
    return %c0_i32, %c0_i32_0 : i32, i32
  }
  func.func @transform_5(%arg0: i32) -> (i32, i32) {
    %c0_i32 = arith.constant 0 : i32
    %c0_i32_0 = arith.constant 0 : i32
    %c0_i32_1 = arith.constant 0 : i32
    return %c0_i32, %c0_i32_0 : i32, i32
  }
  func.func @transform_6(%arg0: i32) -> (i32, i32) {
    %c0_i32 = arith.constant 0 : i32
    %c0_i32_0 = arith.constant 0 : i32
    return %arg0, %c0_i32 : i32, i32
  }
}

</mosaic_0001>

<bundles_post_ra>
// kernel: tpu_custom_call.1
= control target key start
LH: loop header
LB: loop body
LE: loop exit
PB: predicated region body
PF: predicated region fallthrough
CT: control target
= control target key end

     0   :  { %s1088_s0 = inlined_call_operand.hbm [shape: f32[16,32], index: 0, kind: input, shape index: {}]   ;;  %s1089_s1 = inlined_call_operand.hbm [shape: f32[16,32], index: 1, kind: input, shape index: {}]   ;;  %s1090_s2 = inlined_call_operand.hbm [shape: f32[32,32], index: 2, kind: input, shape index: {}]   ;;  %s1091_s3 = inlined_call_operand.vmem [shape: f32[1,32], index: 3, kind: input, shape index: {}]   ;;  %s1092_s4 = inlined_call_operand.vmem [shape: f32[1,32], index: 4, kind: input, shape index: {}]   ;;  %s1093_s5 = inlined_call_operand.vmem [shape: f32[1,32], index: 5, kind: input, shape index: {}]   ;;  %s1094_s6 = inlined_call_operand.hbm [shape: f32[16,32], index: 6, kind: output, shape index: {}]  }
   0x1   :  { %1100 = sst [smem:[#allocation15_spill]] %s1090_s2 }
   0x2   :  { %11 = vsyncpa [#allocation3], 0 }
   0x3   :  { %13 = vsyncpa [#allocation3 + $0x1], 0 }
   0x4   :  { %14 = vsyncpa [#allocation6], 0 }
   0x5   :  { %16 = vsyncpa [#allocation6 + $0x1], 0 }
   0x6   :  { %17 = vsyncpa [#allocation4], 0 }
   0x7   :  { %19 = vsyncpa [#allocation4 + $0x1], 0  ;;  %s873_s21 = smov 0   ;;  %s875_s22 = smov 0  }
   0x8   :  { %s877_s23 = smov 0   ;;  %s879_s24 = smov 0  }
   0x9 LB: > { %1101 = sst [smem:[#allocation13_spill]] %s824_s23  ;;  %s894_s25 = sadd.s32 4294967295, %s828_s24   ;;  %s828_s24 = sphi %s879_s24, %s1122_s24   ;;  %s824_s23 = sphi %s877_s23, %s1119_s23   ;;  %s820_s22 = sphi %s875_s22, %s1121_s22   ;;  %s816_s21 = sphi %s873_s21, %s1120_s21  }
   0xa   : > { %s565_s26 = sadd.s32 4294967294, %s828_s24   ;;  %p45_p0 = scmp.ne.s32.totalorder %s820_s22, %s816_s21 }
   0xb   : > { %p1096_p1 = scmp.eq.s32.totalorder %s894_s25, 0  ;;  %p185_p3 = scmp.eq.s32.totalorder %s565_s26, 1 }
   0xc   : > { %p566_p5 = scmp.ge.s32.totalorder %s828_s24, 1  ;;  %p192_p7 = scmp.lt.s32.totalorder %s828_s24, 3 }
   0xd   : > { %p903_p4 = por %p1096_p1, %p45_p0  ;;  %p908_p6 = por %p185_p3, %p45_p0 }
   0xe   : > { %p913_p8 = pnand %p566_p5, %p192_p7  ;;  %s830_s30 = smov [#allocation7]  }
   0xf   : > { %s1102_s27 = scalar_select %p903_p4, 1, 0 }
  0x10   : > { %s1103_s28 = scalar_select %p908_p6, 1, 0 }
  0x11   : > { %s1104_s29 = scalar_select %p913_p8, 1, 0 }
  0x12   : > { %s204_s7 = sshll.u32 %s830_s30, 4  ;;  %p616_p9 = pneg %p913_p8  ;;  %s205_s7 = int_to_ptr.vmem [resolvable:$true] %s204_s7 }
  0x13   : > { %s927_s9 = sadd.s32 1, %s828_s24   ;;  %s32_s10 = sadd.s32 1, %s824_s23 }
  0x14   : > { %p922_p11 = pnand %p616_p9, %p1096_p1  ;;  %s29_s11 = ssub.s32 %s828_s24, %s927_s9 }
  0x15   : > { %s685_s12 = scalar_lea.vmem %s205_s7, 512  ;;  %p693_p5 = scmp.lt.s32.totalorder %s205_s7, %s205_s7 }
  0x16   : > { %p676_p12 = pneg %p922_p11  ;;  %p686_p13 = scmp.ne.s32.totalorder %s205_s7, %s685_s12 }
  0x17   : > { %p694_p7 = scmp.lt.s32.totalorder %s685_s12, %s685_s12 }
  0x18   : > { %p688_p0 = pnand %p686_p13, %p676_p12 }
  0x19   : > { %p695_p10 = por %p694_p7, %p693_p5 }
  0x1a   : > { %p689_p3 = pneg %p688_p0 }
  0x1c   : > { %p696_p2 = pnand %p695_p10, %p689_p3 }
  0x1e   : > { %699 = shalt.err (!%p696_p2)
}
  0x1f   : > { %s831_s13 = smov 128   ;;  %s832_s14 = smov 8  }
  0x20   : > { %s1106_s2 = sld [smem:[#allocation15_spill]]  ;;  %p30_p9 = scmp.eq.s32.totalorder %s29_s11, 0 }
  0x21   : > { %p39_p12 = scmp.ne.s32.totalorder %s824_s23, %s820_s22  ;;  %p40_p10 = scmp.eq.s32.totalorder %s828_s24, 0 }
  0x22   : > { %p632_p2 = scmp.lt.s32.totalorder %s828_s24, 2  ;;  %p1108_p0 = scmp.eq.s32.totalorder %s894_s25, 1 }
  0x23   : > { %s944_s17 = scalar_select %p30_p9, %s824_s23, %s32_s10  }
  0x24   : > { %p41_p13 = por %p40_p10, %p39_p12  ;;  %p948_p3 = por %p1108_p0, %p39_p12 }
  0x25   : > { %1107 = sst [smem:[#allocation14_spill]] %s944_s17  ;;  %s227_s19 = sand.u32 1, %s824_s23  }
  0x26   : > { %619 = dma.hbm_to_vmem [thread:$0]  (!%p922_p11), %s1106_s2, 512, %s205_s7, [#allocation6], %s831_s13, %s831_s13, %s832_s14  }
  0x27   : > { %s1109_s18 = scalar_select %p948_p3, 1, 0 }
  0x28   : > { %s570_s20 = sshll.u32 %s828_s24, 7  ;;  %s954_s26 = sshll.u32 %s227_s19, 3 }
  0x29   : > { %s959_s7 = scalar_lea.hbm %s1088_s0, %s570_s20  ;;  %s231_s10 = scalar_lea.vmem [#allocation2], %s954_s26 }
  0x2a   : > { %s238_s11 = sshll.u32 %s231_s10, 4  ;;  %p962_p11 = pnand %p632_p2, %p41_p13  ;;  %s239_s11 = int_to_ptr.vmem [resolvable:$true] %s238_s11 }
  0x2b   : > { %s969_s15 = scalar_lea.hbm %s1089_s1, %s570_s20  ;;  %s228_s16 = scalar_lea.sflag [#allocation3], %s227_s19 }
  0x2c   : > { %s700_s30 = scalar_lea.hbm %s959_s7, 128  ;;  %p702_p7 = pneg %p962_p11 }
  0x2d   : > { %p701_p5 = scmp.ne.s32.totalorder %s959_s7, %s700_s30  ;;  %s705_s2 = scalar_lea.hbm %s1088_s0, 256 }
  0x2e   : > { %p706_p10 = scmp.lt.s32.totalorder %s959_s7, %s1088_s0  ;;  %p707_p2 = scmp.lt.s32.totalorder %s705_s2, %s700_s30 }
  0x2f   : > { %p703_p9 = pnand %p702_p7, %p701_p5 }
  0x30   : > { %p708_p13 = por %p707_p2, %p706_p10 }
  0x31   : > { %p704_p12 = pneg %p703_p9 }
  0x33   : > { %p709_p0 = pnand %p708_p13, %p704_p12 }
  0x35   : > { %712 = shalt.err (!%p709_p0)
}
  0x36   : > { %s713_s19 = scalar_lea.vmem %s239_s11, 128  ;;  %s833_s20 = smov [#allocation2]  }
  0x37   : > { %p714_p1 = scmp.ne.s32.totalorder %s239_s11, %s713_s19  ;;  %s718_s13 = sshll.u32 %s833_s20, 4  ;;  %s719_s13 = int_to_ptr.vmem [resolvable:$false] %s718_s13 }
  0x38   : > { %s720_s14 = scalar_lea.vmem %s719_s13, 256  ;;  %p721_p9 = scmp.lt.s32.totalorder %s239_s11, %s719_s13 }
  0x39   : > { %p716_p6 = pnand %p714_p1, %p702_p7  ;;  %p722_p3 = scmp.lt.s32.totalorder %s720_s14, %s713_s19 }
  0x3b   : > { %p717_p5 = pneg %p716_p6  ;;  %p723_p4 = por %p722_p3, %p721_p9 }
  0x3d   : > { %p724_p8 = pnand %p723_p4, %p717_p5 }
  0x3f   : > { %727 = shalt.err (!%p724_p8)
}
  0x40   : > { %623 = dma.hbm_to_vmem [thread:$0]  (!%p962_p11), %s959_s7, 128, %s239_s11, %s228_s16  }
  0x41   : > { %s245_s2 = sand.u32 1, %s828_s24   ;;  %s249_s23 = scalar_lea.vmem [#allocation5], %s954_s26 }
  0x42   : > { %s256_s17 = sshll.u32 %s249_s23, 4  ;;  %s246_s30 = scalar_lea.sflag [#allocation6], %s245_s2  ;;  %s257_s17 = int_to_ptr.vmem [resolvable:$true] %s256_s17 }
  0x43   : > { %s728_s8 = scalar_lea.hbm %s969_s15, 128  ;;  %s733_s20 = scalar_lea.hbm %s1089_s1, 256 }
  0x44   : > { %p729_p1 = scmp.ne.s32.totalorder %s969_s15, %s728_s8  ;;  %p734_p8 = scmp.lt.s32.totalorder %s969_s15, %s1089_s1 }
  0x45   : > { %p735_p3 = scmp.lt.s32.totalorder %s733_s20, %s728_s8 }
  0x46   : > { %p731_p4 = pnand %p729_p1, %p702_p7 }
  0x47   : > { %p736_p12 = por %p735_p3, %p734_p8 }
  0x48   : > { %p732_p6 = pneg %p731_p4 }
  0x4a   : > { %p737_p10 = pnand %p736_p12, %p732_p6 }
  0x4c   : > { %740 = shalt.err (!%p737_p10)
}
  0x4d   : > { %s741_s26 = scalar_lea.vmem %s257_s17, 128  ;;  %s834_s7 = smov [#allocation5]  }
  0x4e   : > { %p742_p2 = scmp.ne.s32.totalorder %s257_s17, %s741_s26  ;;  %s746_s11 = sshll.u32 %s834_s7, 4  ;;  %s747_s11 = int_to_ptr.vmem [resolvable:$false] %s746_s11 }
  0x4f   : > { %s748_s16 = scalar_lea.vmem %s747_s11, 256  ;;  %p749_p5 = scmp.lt.s32.totalorder %s257_s17, %s747_s11 }
  0x50   : > { %p744_p13 = pnand %p742_p2, %p702_p7  ;;  %p750_p9 = scmp.lt.s32.totalorder %s748_s16, %s741_s26 }
  0x52   : > { %p745_p0 = pneg %p744_p13  ;;  %p751_p1 = por %p750_p9, %p749_p5 }
  0x54   : > { %p752_p4 = pnand %p751_p1, %p745_p0 }
  0x56   : > { %755 = shalt.err (!%p752_p4)
}
  0x57   : > { %626 = dma.hbm_to_vmem [thread:$0]  (!%p962_p11), %s969_s15, 128, %s257_s17, %s246_s30  }
  0x58   : > { %p1111_p6 = scmp.ne.s32.totalorder %s1104_s29, 0 }
  0x59   : > { %s1014_s2 = sand.u32 (!%p1111_p6), 1, %s820_s22   ;;  %p1112_p7 = scmp.ne.s32.totalorder (!%p1111_p6), %s1102_s27, 0 }
  0x5a   : > { %265 = sbr.rel (%p1111_p6) target bundleno = 637 (0x27d), region = 44  ;;  %s1017_s23 = sshll.u32 (!%p1111_p6), %s1014_s2, 3 }
  0x5b   : > { %s268_s8 = scalar_lea.sflag (!%p1111_p6), [#allocation3], %s1014_s2  ;;  %s271_s10 = scalar_lea.vmem (!%p1111_p6), [#allocation2], %s1017_s23 }
  0x5f   : > { %799 = dma.done.wait (%p1112_p7), %s268_s8, 128  }
  0x60   : > { %801 = vsyncadd (%p1112_p7), %s268_s8, 4294967168  ;;  %s276_s29 = sand.u32 1, %s894_s25   ;;  %s280_s15 = scalar_lea.vmem [#allocation5], %s1017_s23 }
  0x61   : > { %s277_s12 = scalar_lea.sflag [#allocation6], %s276_s29 }
  0x62   : > { %803 = dma.done.wait (%p1112_p7), %s277_s12, 128  }
  0x63   : > { %805 = vsyncadd (%p1112_p7), %s277_s12, 4294967168  ;;  %p1113_p11 = scmp.eq.s32.totalorder %s894_s25, 0 }
  0x65   : > { %807 = dma.done.wait (%p1113_p11), [#allocation6], 512   ;;  %p1114_p8 = pmov %p1113_p11 }
  0x66   : > { %v835_v0 = vmov 0.0   ;;  %vm836_vm0 = vmmov 0   ;;  %vm330_vm1 = vcmask 261120   ;;  %v322_v1 = vld [vmem:[#allocation7 + $0x18] sm:$0xff]  ;;  %v321_v2 = vld [vmem:[#allocation7 + $0x10] sm:$0xff]  ;;  %v320_v3 = vld [vmem:[#allocation7 + $0x8] sm:$0xff] }
  0x67   : > { %809 = vsyncadd (%p1114_p8), [#allocation6], 4294966784  ;;  %595 = vmatprep.subr.mxu0 %v835_v0  ;;  %603 = vmatprep.mubr.msk.f32.mxu0 %vm836_vm0, %v835_v0  ;;  %v319_v4 = vld [vmem:[#allocation7] sm:$0xff]  ;;  %v416_v8 = vld [vmem:[%s280_s15] sm:$0xff]  ;;  %s587_s14 = sshll.u32 %s894_s25, 7  ;;  %s317_s26 = scalar_lea.vmem [#allocation8], %s1017_s23 }
  0x68   : > { %596 = vmatpush3.xpose.msk.msra.mxu0 %vm330_vm1, %v322_v1  ;;  %v318_v5 = vld [vmem:[%s271_s10] sm:$0xff]  ;;  %s463_s7 = sshll.u32 %s317_s26, 4  ;;  %s461_s8 = scalar_lea.hbm %s1094_s6, %s587_s14  ;;  %s464_s7 = int_to_ptr.vmem [resolvable:$true] %s463_s7 }
  0x69   : > { %597 = vmatprep.subr.mxu0 %v835_v0  ;;  %v578_v6 = vld [vmem:[%s1091_s3] ss:$0 sm:$0xff]  ;;  %s450_s10 = scalar_lea.sflag [#allocation4], %s1014_s2  ;;  %s756_s29 = scalar_lea.vmem %s464_s7, 128 }
  0x6a   : > { %v584_v22 = vld [vmem:[%s1092_s4] ss:$0 sm:$0xff]  ;;  %p757_p3 = scmp.ne.s32.totalorder %s464_s7, %s756_s29  ;;  %p1115_p12 = scmp.ne.s32.totalorder %s1109_s18, 0 }
  0x6b   : > { %v585_v24 = vld [vmem:[%s1093_s5] ss:$0 sm:$0xff]  ;;  %s837_s12 = smov [#allocation8]  }
  0x6c   : > { %598 = vmatpush3.xpose.msk.msra.mxu0 %vm330_vm1, %v321_v2  ;;  %p758_p10 = pnand %p757_p3, %p1115_p12  ;;  %s760_s15 = sshll.u32 %s837_s12, 4  ;;  %s761_s15 = int_to_ptr.vmem [resolvable:$false] %s760_s15 }
  0x6d   : > { %599 = vmatprep.subr.mxu0 %v835_v0  ;;  %s762_s25 = scalar_lea.vmem %s761_s15, 256  ;;  %p763_p13 = scmp.lt.s32.totalorder %s464_s7, %s761_s15 }
  0x6e   : > { %p759_p2 = pneg %p758_p10  ;;  %p764_p0 = scmp.lt.s32.totalorder %s762_s25, %s756_s29 }
  0x70   : > { %600 = vmatpush3.xpose.msk.msra.mxu0 %vm330_vm1, %v320_v3  ;;  %p765_p5 = por %p764_p0, %p763_p13 }
  0x71   : > { %601 = vmatprep.subr.mxu0 %v835_v0 }
  0x72   : > { %p766_p9 = pnand %p765_p5, %p759_p2 }
  0x74   : > { %602 = vmatpush3.xpose.msk.msra.mxu0 %vm330_vm1, %v319_v4 }
  0x77   : > { %604 = vmatmul.mubr.msk.f32.vlgmr.msra.gmra.mxu0 %vm330_vm1, %v318_v5 }
 0x137   : > { %v412_v7 = vpop.f32.mrf.mxu0 }
 0x138   : > { %v413_v9 = vadd.f32 %v578_v6, %v412_v7 }
 0x139   : > { %v605_v10 = vpop.f32.mrf.mxu0 }
 0x13a   : > { %v417_v11 = vadd.f32 %v416_v8, %v413_v9 }
 0x13c   : > { %v418_v12 = vsel %vm330_vm1, %v417_v11, 0.0 }
 0x13d   : > { %419 = vadd.xlane.f32.xlu0 %v418_v12 }
 0x1c6   : > { %v420_v13 = vpop.xlane.xlu0 %419 }
 0x1c7   : > { %v422_v14 = vmul.f32 0.03125, %v420_v13 }
 0x1c9   : > { %v423_v15 = vsub.f32 %v417_v11, %v422_v14 }
 0x1cb   : > { %v424_v16 = vmul.f32 %v423_v15, %v423_v15 }
 0x1cd   : > { %v425_v17 = vsel %vm330_vm1, %v424_v16, 0.0 }
 0x1ce   : > { %426 = vadd.xlane.f32.xlu0 %v425_v17 }
 0x257   : > { %v427_v18 = vpop.xlane.xlu0 %426 }
 0x258   : > { %v428_v19 = vmul.f32 0.03125, %v427_v18 }
 0x25a   : > { %v429_v20 = vadd.f32 1e-12, %v428_v19 }
 0x25c   : > { %672 = vrsqrt.f32 %v429_v20 }
 0x269   : > { %v673_v21 = vpop.eup %672 }
 0x26a   : > { %v432_v23 = vmul.f32 %v673_v21, %v423_v15 }
 0x26c   : > { %v439_v25 = vmul.f32 %v584_v22, %v432_v23 }
 0x26e   : > { %v447_v26 = vadd.f32 %v585_v24, %v439_v25 }
 0x270   : > { %448 = vst.msk [vmem:[%s317_s26] sm:$0xff] %vm330_vm1, %v447_v26 }
 0x271   : > { %769 = shalt.err (!%p766_p9)
}
 0x272   : > { %s770_s23 = scalar_lea.hbm %s461_s8, 128  ;;  %s774_s17 = scalar_lea.hbm %s1094_s6, 256 }
 0x273   : > { %p771_p1 = scmp.ne.s32.totalorder %s461_s8, %s770_s23  ;;  %p775_p7 = scmp.lt.s32.totalorder %s461_s8, %s1094_s6 }
 0x274   : > { %p776_p11 = scmp.lt.s32.totalorder %s774_s17, %s770_s23 }
 0x275   : > { %p772_p4 = pnand %p771_p1, %p1115_p12 }
 0x276   : > { %p777_p8 = por %p776_p11, %p775_p7 }
 0x277   : > { %p773_p6 = pneg %p772_p4 }
 0x279   : > { %p778_p3 = pnand %p777_p8, %p773_p6 }
 0x27b   : > { %781 = shalt.err (!%p778_p3)
}
 0x27c   : > { %614 = dma.vmem_to_hbm [thread:$0]  (%p1115_p12), %s464_s7, 128, %s461_s8, %s450_s10  }
 0x27d PF: > { %s475_s20 = sand.u32 1, %s816_s21   ;;  %p1116_p10 = scmp.ne.s32.totalorder %s1103_s28, 0 }
 0x27e   : > { %p1117_p2 = scmp.ge.s32.totalorder %s828_s24, 2  ;;  %s476_s13 = scalar_lea.sflag [#allocation4], %s475_s20 }
 0x280   : > { %p628_p13 = pnand %p1117_p2, %p1116_p10 }
 0x282   : > { %p629_p0 = pneg %p628_p13 }
 0x284   : > { %811 = dma.done.wait (%p629_p0), %s476_s13, 128  }
 0x285   : > { %813 = vsyncadd (%p629_p0), %s476_s13, 4294967168  ;;  %s1118_s14 = sld [smem:[#allocation13_spill]]  ;;  %p22_p5 = scmp.ge.s32.totalorder %s927_s9, 4  }
 0x286   : > { %s1119_s23 = sld [smem:[#allocation14_spill]]  ;;  %s1120_s21 = smov %s820_s22 }
 0x287   : > { %s1122_s24 = smov %s927_s9  ;;  %24 = sbr.rel (!%p22_p5) target bundleno = 9 (0x9), region = 106 }
 0x28b   : > { %s1121_s22 = smov %s1118_s14 }
 0x28c   :  { %481 = vsyncpa [#allocation3], 1 }
 0x28d   :  { %483 = vsyncpa [#allocation3 + $0x1], 1 }
 0x28e   :  { %484 = vsyncpa [#allocation6], 1 }
 0x28f   :  { %486 = vsyncpa [#allocation6 + $0x1], 1 }
 0x290   :  { %487 = vsyncpa [#allocation4], 1 }
 0x291   :  { %489 = vsyncpa [#allocation4 + $0x1], 1 }

</bundles_post_ra>
